<compile_context>
chip_gen: v5e
topology: v5e:2x2
jax: 0.10.0
libtpu: 0.0.40
codegen_flags: <defaults>
</compile_context>

<pallas_src>
import jax
import jax.numpy as jnp
from jax import lax
from jax.experimental import pallas as pl
from jax.experimental.pallas import tpu as pltpu

EPS = 1e-5  # PyTorch BatchNorm1d default eps

# Set to jnp.bfloat16 on v6e/v7x for full-rate MXU at production sizes
# (keep f32 here so the tight correctness check against the f32 reference holds).
COMPUTE_DTYPE = jnp.float32


def _make_kernel(CIN, C0, C1, T, N, K1, D1):
    inv_n = 1.0 / float(N)

    def bn_affine(y, g, be):
        # Single-pass training-mode batch stats: var = E[y^2] - E[y]^2.
        s = jnp.sum(y, axis=1, keepdims=True)
        ss = jnp.sum(y * y, axis=1, keepdims=True)
        mean = s * inv_n
        var = ss * inv_n - mean * mean
        scale = g * lax.rsqrt(var + EPS)          # rsqrt -> EUP slot
        shift = be - mean * scale
        return y * scale + shift                  # one mul + one add per element

    def mm(a, b):
        return jnp.dot(a.astype(COMPUTE_DTYPE), b.astype(COMPUTE_DTYPE),
                       preferred_element_type=jnp.float32)

    def kernel(xim0_ref,                 # (K0*CIN, N) pre-built im2col of causally padded x
               x_ref,                    # (CIN, N)    raw x (lane = flattened B*T), downsample branch
               tpos_ref,                 # (1, N) int32, position-within-sequence (n % T)
               w0_ref, g0_ref, be0_ref,  # (C0, K0*CIN), (C0, 1), (C0, 1)
               w1_ref, g1_ref, be1_ref,  # (C1, K1*C0),  (C1, 1), (C1, 1)
               wd_ref, gd_ref, bed_ref,  # (C1, CIN),    (C1, 1), (C1, 1)
               out_ref):                 # (C1, N)
        tpos = tpos_ref[...]

        # ---- tcn0: single im2col matmul over the whole B*T lane axis ----
        # (conv bias omitted: it cancels exactly under training-mode BN)
        y0 = mm(w0_ref[...], xim0_ref[...])                         # (C0, N) f32
        x1 = jnp.maximum(bn_affine(y0, g0_ref[...], be0_ref[...]), 0.0)

        # ---- in-kernel im2col for tcn1: causal shift + batch-boundary mask ----
        slabs = []
        for t in range(K1):
            s = (K1 - 1 - t) * D1
            if s == 0:
                slabs.append(x1)
            else:
                shifted = jnp.concatenate(
                    [jnp.zeros((C0, s), jnp.float32), x1[:, :N - s]], axis=1)
                slabs.append(jnp.where(tpos >= s, shifted, 0.0))
        xim1 = jnp.concatenate(slabs, axis=0)                       # (K1*C0, N)

        y1 = mm(w1_ref[...], xim1)                                  # (C1, N)
        y1 = bn_affine(y1, g1_ref[...], be1_ref[...])

        # ---- 1x1 downsample branch on the original (un-shifted) x ----
        yd = mm(wd_ref[...], x_ref[...])                            # (C1, N)
        res = jnp.maximum(bn_affine(yd, gd_ref[...], bed_ref[...]), 0.0)

        # ---- residual add + ReLU, lane-dense store ----
        out_ref[...] = jnp.maximum(y1 + res, 0.0)

    return kernel


def temp_block1_forward(x, p, dil):
    """x: (B, C_in0, T) float32, PyTorch NCW layout. Returns (B, C_out1, T)."""
    B, CIN, T = x.shape
    C0, _, K0 = p["w0"].shape
    C1, _, K1 = p["w1"].shape
    D0, D1 = dil
    N = B * T
    assert (K1 - 1) * D1 < T, "tcn1 causal receptive field must fit one sequence"

    f32 = jnp.float32
    xt = jnp.transpose(x.astype(f32), (1, 0, 2))                    # (CIN, B, T)
    x2d = xt.reshape(CIN, N)                                        # lane axis = B*T

    # Glue: im2col for tcn0 (tap t uses x shifted right by (K0-1-t)*D0, causal zeros).
    taps = []
    for t in range(K0):
        s = (K0 - 1 - t) * D0
        taps.append(jnp.pad(xt, ((0, 0), (0, 0), (s, 0)))[:, :, :T])
    xim0 = jnp.concatenate(taps, axis=0).reshape(K0 * CIN, N)       # (K0*CIN, N)

    tpos = jnp.tile(jnp.arange(T, dtype=jnp.int32), B).reshape(1, N)

    # Tap-major im2col weight matrices (column block t = W[:, :, t]).
    w0im = jnp.transpose(p["w0"], (0, 2, 1)).reshape(C0, K0 * CIN).astype(f32)
    w1im = jnp.transpose(p["w1"], (0, 2, 1)).reshape(C1, K1 * C0).astype(f32)
    wd2d = p["wd"][:, :, 0].astype(f32)                             # (C1, CIN)
    col = lambda v: v.reshape(-1, 1).astype(f32)                    # (C, 1)

    kernel = _make_kernel(CIN, C0, C1, T, N, K1, D1)
    vmem = pl.BlockSpec(memory_space=pltpu.MemorySpace.VMEM)

    out2d = pl.pallas_call(
        kernel,
        out_shape=jax.ShapeDtypeStruct((C1, N), f32),
        in_specs=[vmem] * 12,
        out_specs=vmem,
    )(xim0, x2d, tpos,
      w0im, col(p["g0"]), col(p["be0"]),
      w1im, col(p["g1"]), col(p["be1"]),
      wd2d, col(p["gd"]), col(p["bed"]))

    # Back to PyTorch NCW layout.
    return jnp.transpose(out2d.reshape(C1, B, T), (1, 0, 2))


# ---------------- pure-JAX reference (for correctness check) ----------------
def _ref_forward(x, p, dil):
    D0, D1 = dil

    def conv1d(x, w, b, d):
        k = w.shape[-1]
        pad = (k - 1) * d
        y = lax.conv_general_dilated(
            x, w, window_strides=(1,), padding=[(pad, 0)],
            rhs_dilation=(d,), dimension_numbers=("NCH", "OIH", "NCH"))
        return y + b[None, :, None]

    def bn(x, g, be):
        m = jnp.mean(x, axis=(0, 2), keepdims=True)
        v = jnp.mean(jnp.square(x - m), axis=(0, 2), keepdims=True)
        return g[None, :, None] * (x - m) * lax.rsqrt(v + EPS) + be[None, :, None]

    x1 = jax.nn.relu(bn(conv1d(x, p["w0"], p["b0"], D0), p["g0"], p["be0"]))
    x2 = bn(conv1d(x1, p["w1"], p["b1"], D1), p["g1"], p["be1"])
    res = jax.nn.relu(bn(conv1d(x, p["wd"], p["bd"], 1), p["gd"], p["bed"]))
    return jax.nn.relu(x2 + res)


if __name__ == "__main__":
    # Module hyperparameters (small, consistent with TempBlock1's __init__)
    B, T = 2, 16
    ch_in = (4, 8)      # (ch_in0, ch_in1);  ch_in1 == ch_out0
    ch_out = (8, 8)     # (ch_out0, ch_out1)
    k_size = (3, 3)
    dil = (1, 2)

    key = jax.random.PRNGKey(0)
    ks = jax.random.split(key, 12)
    # Deterministic synthetic parameters (conv weights ~ N(0, 0.01) like init_weights)
    p = {
        "w0": 0.01 * jax.random.normal(ks[0], (ch_out[0], ch_in[0], k_size[0]), jnp.float32),
        "b0": 0.1 * jax.random.normal(ks[1], (ch_out[0],), jnp.float32),
        "g0": 1.0 + 0.1 * jax.random.normal(ks[2], (ch_out[0],), jnp.float32),
        "be0": 0.05 * jax.random.normal(ks[3], (ch_out[0],), jnp.float32),
        "w1": 0.01 * jax.random.normal(ks[4], (ch_out[1], ch_in[1], k_size[1]), jnp.float32),
        "b1": 0.1 * jax.random.normal(ks[5], (ch_out[1],), jnp.float32),
        "g1": 1.0 + 0.1 * jax.random.normal(ks[6], (ch_out[1],), jnp.float32),
        "be1": 0.05 * jax.random.normal(ks[7], (ch_out[1],), jnp.float32),
        "wd": 0.01 * jax.random.normal(ks[8], (ch_out[1], ch_in[0], 1), jnp.float32),
        "bd": 0.1 * jax.random.normal(ks[9], (ch_out[1],), jnp.float32),
        "gd": 1.0 + 0.1 * jax.random.normal(ks[10], (ch_out[1],), jnp.float32),
        "bed": 0.05 * jax.random.normal(ks[11], (ch_out[1],), jnp.float32),
    }

    x = jax.random.normal(jax.random.PRNGKey(1), (B, ch_in[0], T), jnp.float32)

    out = jax.block_until_ready(temp_block1_forward(x, p, dil))
    assert out.shape == (B, ch_out[1], T)

    ref = _ref_forward(x, p, dil)
    err = float(jnp.max(jnp.abs(out - ref)))
    assert err < 1e-4, f"kernel/reference mismatch, max abs err = {err}"

    print("KERNEL_OK")
</pallas_src>

<mosaic_0001>
module attributes {stable_mosaic.version = 11 : i64} {
  func.func @kernel(%arg0: memref<12x32xf32, #tpu.memory_space<vmem>>, %arg1: memref<4x32xf32, #tpu.memory_space<vmem>>, %arg2: memref<1x32xi32, #tpu.memory_space<vmem>>, %arg3: memref<8x12xf32, #tpu.memory_space<vmem>>, %arg4: memref<8x1xf32, #tpu.memory_space<vmem>>, %arg5: memref<8x1xf32, #tpu.memory_space<vmem>>, %arg6: memref<8x24xf32, #tpu.memory_space<vmem>>, %arg7: memref<8x1xf32, #tpu.memory_space<vmem>>, %arg8: memref<8x1xf32, #tpu.memory_space<vmem>>, %arg9: memref<8x4xf32, #tpu.memory_space<vmem>>, %arg10: memref<8x1xf32, #tpu.memory_space<vmem>>, %arg11: memref<8x1xf32, #tpu.memory_space<vmem>>, %arg12: memref<8x32xf32, #tpu.memory_space<vmem>>) attributes {dimension_semantics = [], scalar_prefetch = 0 : i64, scratch_operands = 0 : i64, tpu.core_type = #tpu.core_type<tc>} {
    %c0 = arith.constant 0 : index
    %c0_0 = arith.constant 0 : index
    %0 = vector.load %arg2[%c0, %c0_0] : memref<1x32xi32, #tpu.memory_space<vmem>>, vector<1x32xi32>
    %c0_1 = arith.constant 0 : index
    %c0_2 = arith.constant 0 : index
    %1 = vector.load %arg3[%c0_1, %c0_2] : memref<8x12xf32, #tpu.memory_space<vmem>>, vector<8x12xf32>
    %c0_3 = arith.constant 0 : index
    %c0_4 = arith.constant 0 : index
    %2 = vector.load %arg0[%c0_3, %c0_4] : memref<12x32xf32, #tpu.memory_space<vmem>>, vector<12x32xf32>
    %cst = arith.constant dense<0.000000e+00> : vector<8x32xf32>
    %3 = tpu.matmul %1, %2, %cst {dimension_numbers = #tpu.dot_dimension_numbers<[1], [0], [0], [1], [0, 0, 1, 1], [], []>} : vector<8x12xf32>, vector<12x32xf32>, vector<8x32xf32> -> vector<8x32xf32>
    %c0_5 = arith.constant 0 : index
    %c0_6 = arith.constant 0 : index
    %4 = vector.load %arg4[%c0_5, %c0_6] : memref<8x1xf32, #tpu.memory_space<vmem>>, vector<8x1xf32>
    %c0_7 = arith.constant 0 : index
    %c0_8 = arith.constant 0 : index
    %5 = vector.load %arg5[%c0_7, %c0_8] : memref<8x1xf32, #tpu.memory_space<vmem>>, vector<8x1xf32>
    %cst_9 = arith.constant dense<0.000000e+00> : vector<8xf32>
    %6 = vector.multi_reduction <add>, %3, %cst_9 [1] : vector<8x32xf32> to vector<8xf32>
    %7 = vector.shape_cast %6 : vector<8xf32> to vector<8x1xf32>
    %8 = arith.mulf %3, %3 : vector<8x32xf32>
    %cst_10 = arith.constant dense<0.000000e+00> : vector<8xf32>
    %9 = vector.multi_reduction <add>, %8, %cst_10 [1] : vector<8x32xf32> to vector<8xf32>
    %10 = vector.shape_cast %9 : vector<8xf32> to vector<8x1xf32>
    %cst_11 = arith.constant 3.125000e-02 : f32
    %11 = vector.broadcast %cst_11 : f32 to vector<8x1xf32>
    %12 = arith.mulf %7, %11 : vector<8x1xf32>
    %cst_12 = arith.constant 3.125000e-02 : f32
    %13 = vector.broadcast %cst_12 : f32 to vector<8x1xf32>
    %14 = arith.mulf %10, %13 : vector<8x1xf32>
    %15 = arith.mulf %12, %12 : vector<8x1xf32>
    %16 = arith.subf %14, %15 : vector<8x1xf32>
    %cst_13 = arith.constant 9.99999974E-6 : f32
    %17 = vector.broadcast %cst_13 : f32 to vector<8x1xf32>
    %18 = arith.addf %16, %17 : vector<8x1xf32>
    %19 = math.rsqrt %18 : vector<8x1xf32>
    %20 = arith.mulf %4, %19 : vector<8x1xf32>
    %21 = arith.mulf %12, %20 : vector<8x1xf32>
    %22 = arith.subf %5, %21 : vector<8x1xf32>
    %23 = vector.broadcast %20 : vector<8x1xf32> to vector<8x32xf32>
    %24 = arith.mulf %3, %23 : vector<8x32xf32>
    %25 = vector.broadcast %22 : vector<8x1xf32> to vector<8x32xf32>
    %26 = arith.addf %24, %25 : vector<8x32xf32>
    %cst_14 = arith.constant 0.000000e+00 : f32
    %27 = vector.broadcast %cst_14 : f32 to vector<8x32xf32>
    %28 = arith.maximumf %26, %27 : vector<8x32xf32>
    %cst_15 = arith.constant 0.000000e+00 : f32
    %29 = vector.broadcast %cst_15 : f32 to vector<8x4xf32>
    %30 = vector.extract_strided_slice %28 {offsets = [0, 0], sizes = [8, 28], strides = [1, 1]} : vector<8x32xf32> to vector<8x28xf32>
    %31 = tpu.concatenate %29, %30 in 1 : vector<8x4xf32>, vector<8x28xf32> -> vector<8x32xf32>
    %c4_i32 = arith.constant 4 : i32
    %32 = vector.broadcast %c4_i32 : i32 to vector<1x32xi32>
    %33 = arith.cmpi sge, %0, %32 : vector<1x32xi32>
    %cst_16 = arith.constant 0.000000e+00 : f32
    %34 = vector.shape_cast %33 : vector<1x32xi1> to vector<1x32xi1>
    %35 = vector.broadcast %34 : vector<1x32xi1> to vector<8x32xi1>
    %36 = vector.broadcast %cst_16 : f32 to vector<8x32xf32>
    %37 = arith.select %35, %31, %36 : vector<8x32xi1>, vector<8x32xf32>
    %cst_17 = arith.constant 0.000000e+00 : f32
    %38 = vector.broadcast %cst_17 : f32 to vector<8x2xf32>
    %39 = vector.extract_strided_slice %28 {offsets = [0, 0], sizes = [8, 30], strides = [1, 1]} : vector<8x32xf32> to vector<8x30xf32>
    %40 = tpu.concatenate %38, %39 in 1 : vector<8x2xf32>, vector<8x30xf32> -> vector<8x32xf32>
    %c2_i32 = arith.constant 2 : i32
    %41 = vector.broadcast %c2_i32 : i32 to vector<1x32xi32>
    %42 = arith.cmpi sge, %0, %41 : vector<1x32xi32>
    %cst_18 = arith.constant 0.000000e+00 : f32
    %43 = vector.shape_cast %42 : vector<1x32xi1> to vector<1x32xi1>
    %44 = vector.broadcast %43 : vector<1x32xi1> to vector<8x32xi1>
    %45 = vector.broadcast %cst_18 : f32 to vector<8x32xf32>
    %46 = arith.select %44, %40, %45 : vector<8x32xi1>, vector<8x32xf32>
    %47 = tpu.concatenate %37, %46, %28 in 0 : vector<8x32xf32>, vector<8x32xf32>, vector<8x32xf32> -> vector<24x32xf32>
    %c0_19 = arith.constant 0 : index
    %c0_20 = arith.constant 0 : index
    %48 = vector.load %arg6[%c0_19, %c0_20] : memref<8x24xf32, #tpu.memory_space<vmem>>, vector<8x24xf32>
    %cst_21 = arith.constant dense<0.000000e+00> : vector<8x32xf32>
    %49 = tpu.matmul %48, %47, %cst_21 {dimension_numbers = #tpu.dot_dimension_numbers<[1], [0], [0], [1], [0, 0, 1, 1], [], []>} : vector<8x24xf32>, vector<24x32xf32>, vector<8x32xf32> -> vector<8x32xf32>
    %c0_22 = arith.constant 0 : index
    %c0_23 = arith.constant 0 : index
    %50 = vector.load %arg7[%c0_22, %c0_23] : memref<8x1xf32, #tpu.memory_space<vmem>>, vector<8x1xf32>
    %c0_24 = arith.constant 0 : index
    %c0_25 = arith.constant 0 : index
    %51 = vector.load %arg8[%c0_24, %c0_25] : memref<8x1xf32, #tpu.memory_space<vmem>>, vector<8x1xf32>
    %cst_26 = arith.constant dense<0.000000e+00> : vector<8xf32>
    %52 = vector.multi_reduction <add>, %49, %cst_26 [1] : vector<8x32xf32> to vector<8xf32>
    %53 = vector.shape_cast %52 : vector<8xf32> to vector<8x1xf32>
    %54 = arith.mulf %49, %49 : vector<8x32xf32>
    %cst_27 = arith.constant dense<0.000000e+00> : vector<8xf32>
    %55 = vector.multi_reduction <add>, %54, %cst_27 [1] : vector<8x32xf32> to vector<8xf32>
    %56 = vector.shape_cast %55 : vector<8xf32> to vector<8x1xf32>
    %cst_28 = arith.constant 3.125000e-02 : f32
    %57 = vector.broadcast %cst_28 : f32 to vector<8x1xf32>
    %58 = arith.mulf %53, %57 : vector<8x1xf32>
    %cst_29 = arith.constant 3.125000e-02 : f32
    %59 = vector.broadcast %cst_29 : f32 to vector<8x1xf32>
    %60 = arith.mulf %56, %59 : vector<8x1xf32>
    %61 = arith.mulf %58, %58 : vector<8x1xf32>
    %62 = arith.subf %60, %61 : vector<8x1xf32>
    %cst_30 = arith.constant 9.99999974E-6 : f32
    %63 = vector.broadcast %cst_30 : f32 to vector<8x1xf32>
    %64 = arith.addf %62, %63 : vector<8x1xf32>
    %65 = math.rsqrt %64 : vector<8x1xf32>
    %66 = arith.mulf %50, %65 : vector<8x1xf32>
    %67 = arith.mulf %58, %66 : vector<8x1xf32>
    %68 = arith.subf %51, %67 : vector<8x1xf32>
    %69 = vector.broadcast %66 : vector<8x1xf32> to vector<8x32xf32>
    %70 = arith.mulf %49, %69 : vector<8x32xf32>
    %71 = vector.broadcast %68 : vector<8x1xf32> to vector<8x32xf32>
    %72 = arith.addf %70, %71 : vector<8x32xf32>
    %c0_31 = arith.constant 0 : index
    %c0_32 = arith.constant 0 : index
    %73 = vector.load %arg9[%c0_31, %c0_32] : memref<8x4xf32, #tpu.memory_space<vmem>>, vector<8x4xf32>
    %c0_33 = arith.constant 0 : index
    %c0_34 = arith.constant 0 : index
    %74 = vector.load %arg1[%c0_33, %c0_34] : memref<4x32xf32, #tpu.memory_space<vmem>>, vector<4x32xf32>
    %cst_35 = arith.constant dense<0.000000e+00> : vector<8x32xf32>
    %75 = tpu.matmul %73, %74, %cst_35 {dimension_numbers = #tpu.dot_dimension_numbers<[1], [0], [0], [1], [0, 0, 1, 1], [], []>} : vector<8x4xf32>, vector<4x32xf32>, vector<8x32xf32> -> vector<8x32xf32>
    %c0_36 = arith.constant 0 : index
    %c0_37 = arith.constant 0 : index
    %76 = vector.load %arg10[%c0_36, %c0_37] : memref<8x1xf32, #tpu.memory_space<vmem>>, vector<8x1xf32>
    %c0_38 = arith.constant 0 : index
    %c0_39 = arith.constant 0 : index
    %77 = vector.load %arg11[%c0_38, %c0_39] : memref<8x1xf32, #tpu.memory_space<vmem>>, vector<8x1xf32>
    %cst_40 = arith.constant dense<0.000000e+00> : vector<8xf32>
    %78 = vector.multi_reduction <add>, %75, %cst_40 [1] : vector<8x32xf32> to vector<8xf32>
    %79 = vector.shape_cast %78 : vector<8xf32> to vector<8x1xf32>
    %80 = arith.mulf %75, %75 : vector<8x32xf32>
    %cst_41 = arith.constant dense<0.000000e+00> : vector<8xf32>
    %81 = vector.multi_reduction <add>, %80, %cst_41 [1] : vector<8x32xf32> to vector<8xf32>
    %82 = vector.shape_cast %81 : vector<8xf32> to vector<8x1xf32>
    %cst_42 = arith.constant 3.125000e-02 : f32
    %83 = vector.broadcast %cst_42 : f32 to vector<8x1xf32>
    %84 = arith.mulf %79, %83 : vector<8x1xf32>
    %cst_43 = arith.constant 3.125000e-02 : f32
    %85 = vector.broadcast %cst_43 : f32 to vector<8x1xf32>
    %86 = arith.mulf %82, %85 : vector<8x1xf32>
    %87 = arith.mulf %84, %84 : vector<8x1xf32>
    %88 = arith.subf %86, %87 : vector<8x1xf32>
    %cst_44 = arith.constant 9.99999974E-6 : f32
    %89 = vector.broadcast %cst_44 : f32 to vector<8x1xf32>
    %90 = arith.addf %88, %89 : vector<8x1xf32>
    %91 = math.rsqrt %90 : vector<8x1xf32>
    %92 = arith.mulf %76, %91 : vector<8x1xf32>
    %93 = arith.mulf %84, %92 : vector<8x1xf32>
    %94 = arith.subf %77, %93 : vector<8x1xf32>
    %95 = vector.broadcast %92 : vector<8x1xf32> to vector<8x32xf32>
    %96 = arith.mulf %75, %95 : vector<8x32xf32>
    %97 = vector.broadcast %94 : vector<8x1xf32> to vector<8x32xf32>
    %98 = arith.addf %96, %97 : vector<8x32xf32>
    %cst_45 = arith.constant 0.000000e+00 : f32
    %99 = vector.broadcast %cst_45 : f32 to vector<8x32xf32>
    %100 = arith.maximumf %98, %99 : vector<8x32xf32>
    %101 = arith.addf %72, %100 : vector<8x32xf32>
    %cst_46 = arith.constant 0.000000e+00 : f32
    %102 = vector.broadcast %cst_46 : f32 to vector<8x32xf32>
    %103 = arith.maximumf %101, %102 : vector<8x32xf32>
    %c0_47 = arith.constant 0 : index
    %c0_48 = arith.constant 0 : index
    %104 = vector.load %arg12[%c0_47, %c0_48] : memref<8x32xf32, #tpu.memory_space<vmem>>, vector<8x32xf32>
    tpu.vector_store %arg12[%c0_47, %c0_48], %103 {strides = array<i32>} : memref<8x32xf32, #tpu.memory_space<vmem>>, vector<8x32xf32>,
    return
  }
}

</mosaic_0001>

<bundles_post_ra>
// kernel: tpu_custom_call.1
= control target key start
LH: loop header
LB: loop body
LE: loop exit
PB: predicated region body
PF: predicated region fallthrough
CT: control target
= control target key end

     0   :  { %vm50_vm0 = vcmask 1043456   ;;  %vm46_vm1 = vcmask 97280   ;;  %s461_s0 = inlined_call_operand.vmem [shape: f32[12,32], index: 0, kind: input, shape index: {}]   ;;  %s462_s1 = inlined_call_operand.vmem [shape: f32[4,32], index: 1, kind: input, shape index: {}]   ;;  %s463_s2 = inlined_call_operand.vmem [shape: s32[1,32], index: 2, kind: input, shape index: {}]   ;;  %s464_s3 = inlined_call_operand.vmem [shape: f32[8,12], index: 3, kind: input, shape index: {}]   ;;  %s465_s4 = inlined_call_operand.vmem [shape: f32[8,1], index: 4, kind: input, shape index: {}]   ;;  %s466_s5 = inlined_call_operand.vmem [shape: f32[8,1], index: 5, kind: input, shape index: {}]   ;;  %s467_s6 = inlined_call_operand.vmem [shape: f32[8,24], index: 6, kind: input, shape index: {}]   ;;  %s468_s7 = inlined_call_operand.vmem [shape: f32[8,1], index: 7, kind: input, shape index: {}]   ;;  %s469_s8 = inlined_call_operand.vmem [shape: f32[8,1], index: 8, kind: input, shape index: {}]   ;;  %s470_s9 = inlined_call_operand.vmem [shape: f32[8,4], index: 9, kind: input, shape index: {}]   ;;  %s471_s10 = inlined_call_operand.vmem [shape: f32[8,1], index: 10, kind: input, shape index: {}]   ;;  %s472_s11 = inlined_call_operand.vmem [shape: f32[8,1], index: 11, kind: input, shape index: {}]   ;;  %s473_s12 = inlined_call_operand.hbm [shape: f32[8,32], index: 12, kind: output, shape index: {}]  }
   0x1   :  { %v45_v0 = vld [vmem:[%s461_s0 + $0x8] sm:$0xf]  ;;  %v44_v1 = vld [vmem:[%s461_s0] sm:$0xff] }
   0x2   :  { %287 = vmatpush.msk.msra.mxu0 %vm50_vm0, %v45_v0  ;;  %v43_v2 = vld [vmem:[%s464_s3] sm:$0xff] }
   0x3   :  { %17 = vsyncpa [#allocation3], 0  ;;  %vm76_vm2 = vcmask 261120   ;;  %v333_v7 = vmov 0   ;;  %v201_v14 = vld [vmem:[%s462_s1] sm:$0xf] }
   0x4   :  { %69 = vmatpush.msra.mxu0 %v44_v1  ;;  %298 = vset.pattern.permute.xlu1 %v333_v7  ;;  %vm119_vm3 = vcmask 31744   ;;  %v200_v15 = vld [vmem:[%s470_s9] sm:$0xff]  ;;  %s335_s13 = smov 4   ;;  %vm129_vm9 = vcmask 15360   ;;  %vm137_vm12 = vcmask 195584   ;;  %s278_s24 = sshll.u32 %s473_s12, 4  ;;  %s279_s24 = int_to_ptr.hbm [resolvable:$true] %s278_s24 }
   0x5   :  { %288 = vmatmul.msk.f32.vlgmr.msra.gmra.mxu0 %vm46_vm1, %v43_v2  ;;  %300 = vset.pattern.permute.xlu2 %v333_v7  ;;  %v74_v22 = vld [vmem:[%s465_s4] sm:$0xff]  ;;  %s334_s4 = smov 2  }
   0x6   :  { %299 = vset.pattern.permute.xlu0 %v333_v7  ;;  %292 = vmatpush.msk.msra.mxu2 %vm50_vm0, %v201_v14  ;;  %v75_v27 = vld [vmem:[%s466_s5] sm:$0xff] }
   0x7   :  { %293 = vmatmul.msk.f32.vlgmr.msra.gmra.mxu2 %vm119_vm3, %v200_v15  ;;  %v42_v38 = vld [vmem:[%s463_s2] sm:$0x1] }
   0x8   :  { %vm131_vm7 = vcmp.ge.s32.totalorder %v42_v38, 2  ;;  %vm121_vm8 = vcmp.ge.s32.totalorder %v42_v38, 4  ;;  %v136_v46 = vld [vmem:[%s467_s6] sm:$0xff] }
   0x9   :  { %v132_v39 = vsel %vm131_vm7, 1, %v333_v7  ;;  %v122_v42 = vsel %vm121_vm8, 1, %v333_v7  ;;  %v228_v60 = vld [vmem:[%s471_s10] sm:$0xff] }
   0xa   :  { %v133_v40 = vperm.slane %v132_v39, 0  ;;  %v123_v44 = vperm.slane %v122_v42, 0 }
   0xc   :  { %vm134_vm10 = vcmp.eq.s32.totalorder %v133_v40, 1  ;;  %vm124_vm11 = vcmp.eq.s32.totalorder %v123_v44, 1 }
  0x82   :  { %v71_v3 = vpop.f32.mrf.mxu0 }
  0x83   :  { %v77_v4 = vsel %vm76_vm2, %v71_v3, 0.0  ;;  %v80_v5 = vmul.f32 %v71_v3, %v71_v3 }
  0x84   :  { %78 = vadd.xlane.f32.xlu0 %v77_v4 }
  0x85   :  { %v81_v6 = vsel %vm76_vm2, %v80_v5, 0.0  ;;  %v229_v5 = vld [vmem:[%s472_s11] sm:$0xff] }
  0x8a   :  { %v428_v29 = vpop.f32.mrf.mxu2 }
  0x8b   :  { %v230_v30 = vsel %vm76_vm2, %v428_v29, 0.0  ;;  %v233_v36 = vmul.f32 %v428_v29, %v428_v29 }
  0x8c   :  { %82 = vadd.xlane.f32.xlu0 %v81_v6 }
  0x8d   :  { %v234_v37 = vsel %vm76_vm2, %v233_v36, 0.0 }
  0x94   :  { %231 = vadd.xlane.f32.xlu0 %v230_v30 }
  0xf7   :  { %v79_v8 = vpop.xlane.xlu0 %78 }
  0xf8   :  { %v84_v9 = vmul.f32 0.03125, %v79_v8 }
  0xfa   :  { %v86_v11 = vmul.f32 %v84_v9, %v84_v9 }
  0xff   :  { %v83_v10 = vpop.xlane.xlu0 %82 }
 0x100   :  { %v85_v12 = vmul.f32 0.03125, %v83_v10 }
 0x102   :  { %v87_v13 = vsub.f32 %v85_v12, %v86_v11 }
 0x104   :  { %v88_v16 = vadd.f32 1e-05, %v87_v13 }
 0x106   :  { %301 = vrsqrt.f32 %v88_v16  ;;  %vm95_vm5 = vweird.f32 %v88_v16 }
 0x107   :  { %v232_v48 = vpop.xlane.xlu0 %231 }
 0x108   :  { %v237_v49 = vmul.f32 0.03125, %v232_v48 }
 0x10a   :  { %v239_v50 = vmul.f32 %v237_v49, %v237_v49 }
 0x10c   :  { %v302_v17 = vpop.eup %301 }
 0x10d   :  { %v90_v18 = vmul.f32 %v302_v17, %v88_v16  ;;  %vm96_vm4 = vweird.f32 %v302_v17 }
 0x10e   :  { %vm97_vm6 = vmor %vm95_vm5, %vm96_vm4 }
 0x10f   :  { %v91_v19 = vmul.f32 %v302_v17, %v90_v18 }
 0x111   :  { %v92_v20 = vmul.f32 0.5, %v91_v19  ;;  %v161_v19 = vld [vmem:[%s468_s7] sm:$0xff]  ;;  %s336_s7 = smov [#allocation2]  }
 0x112   :  { %s276_s21 = sshll.u32 %s336_s7, 4  ;;  %s277_s21 = int_to_ptr.vmem [resolvable:$true] %s276_s21 }
 0x113   :  { %v93_v21 = vsub.f32 1.5, %v92_v20 }
 0x115   :  { %v94_v23 = vmul.f32 %v302_v17, %v93_v21 }
 0x117   :  { %v98_v24 = vsel %vm97_vm6, %v302_v17, %v94_v23 }
 0x118   :  { %v99_v25 = vmul.f32 %v98_v24, %v74_v22  ;;  %v162_v24 = vld [vmem:[%s469_s8] sm:$0xff] }
 0x11a   :  { %104 = vperm.xlu1 %298, %v99_v25   ;;  %v100_v26 = vmul.f32 %v99_v25, %v84_v9 }
 0x11c   :  { %v101_v28 = vsub.f32 %v75_v27, %v100_v26 }
 0x122   :  { %110 = vperm.xlu1 %298, %v101_v28  }
 0x18c   :  { %v105_v31 = vpop.permute.xlu1 %104 }
 0x18d   :  { %v107_v32 = vmul.f32 %v105_v31, %v71_v3 }
 0x194   :  { %v111_v33 = vpop.permute.xlu1 %110 }
 0x195   :  { %v113_v34 = vadd.f32 %v111_v33, %v107_v32 }
 0x197   :  { %v114_v35 = vmax.f32 %v113_v34, 0.0 }
 0x199   :  { %126 = vrot.lane.b32.xlu2 %v114_v35, %s334_s4  ;;  %154 = vmatpush.msra.mxu1 %v114_v35 }
 0x1a1   :  { %116 = vrot.lane.b32.xlu2 %v114_v35, %s335_s13 }
 0x1ca   :  { %235 = vadd.xlane.f32.xlu2 %v234_v37 }
 0x1f3   :  { %v127_v41 = vpop.permute.xlu2 %126 }
 0x1f4   :  { %v130_v43 = vsel %vm129_vm9, 0.0, %v127_v41 }
 0x1f5   :  { %289 = vmatpush.msk.msra.mxu1 %vm134_vm10, %v130_v43 }
 0x1fb   :  { %v117_v45 = vpop.permute.xlu2 %116 }
 0x1fc   :  { %v120_v47 = vsel %vm119_vm3, 0.0, %v117_v45 }
 0x1fd   :  { %290 = vmatpush.msk.msra.mxu1 %vm124_vm11, %v120_v47 }
 0x1fe   :  { %291 = vmatmul.msk.f32.vlgmr.msra.gmra.mxu1 %vm137_vm12, %v136_v46 }
 0x23d   :  { %v236_v51 = vpop.xlane.xlu2 %235 }
 0x23e   :  { %v238_v52 = vmul.f32 0.03125, %v236_v51 }
 0x240   :  { %v240_v53 = vsub.f32 %v238_v52, %v239_v50 }
 0x242   :  { %v241_v54 = vadd.f32 1e-05, %v240_v53 }
 0x244   :  { %303 = vrsqrt.f32 %v241_v54  ;;  %vm248_vm13 = vweird.f32 %v241_v54 }
 0x24a   :  { %v304_v55 = vpop.eup %303 }
 0x24b   :  { %v243_v56 = vmul.f32 %v304_v55, %v241_v54  ;;  %vm249_vm14 = vweird.f32 %v304_v55 }
 0x24c   :  { %vm250_vm15 = vmor %vm248_vm13, %vm249_vm14 }
 0x24d   :  { %v244_v57 = vmul.f32 %v304_v55, %v243_v56 }
 0x24f   :  { %v245_v58 = vmul.f32 0.5, %v244_v57 }
 0x251   :  { %v246_v59 = vsub.f32 1.5, %v245_v58 }
 0x253   :  { %v247_v61 = vmul.f32 %v304_v55, %v246_v59 }
 0x255   :  { %v251_v62 = vsel %vm250_vm15, %v304_v55, %v247_v61 }
 0x256   :  { %v252_v63 = vmul.f32 %v251_v62, %v228_v60 }
 0x258   :  { %257 = vperm.xlu2 %300, %v252_v63   ;;  %v253_v4 = vmul.f32 %v252_v63, %v237_v49 }
 0x25a   :  { %v254_v6 = vsub.f32 %v229_v5, %v253_v4 }
 0x27b   :  { %v158_v0 = vpop.f32.mrf.mxu1 }
 0x27c   :  { %v166_v1 = vmul.f32 %v158_v0, %v158_v0  ;;  %v163_v2 = vsel %vm76_vm2, %v158_v0, 0.0 }
 0x27d   :  { %164 = vadd.xlane.f32.xlu1 %v163_v2 }
 0x27e   :  { %v167_v3 = vsel %vm76_vm2, %v166_v1, 0.0 }
 0x27f   :  { %168 = vadd.xlane.f32.xlu0 %v167_v3 }
 0x296   :  { %263 = vperm.xlu1 %298, %v254_v6  }
 0x2b2   :  { %v258_v26 = vpop.permute.xlu2 %257 }
 0x2b3   :  { %v260_v30 = vmul.f32 %v258_v26, %v428_v29 }
 0x2f0   :  { %v165_v7 = vpop.xlane.xlu1 %164 }
 0x2f1   :  { %v170_v8 = vmul.f32 0.03125, %v165_v7 }
 0x2f2   :  { %v169_v9 = vpop.xlane.xlu0 %168 }
 0x2f3   :  { %v172_v10 = vmul.f32 %v170_v8, %v170_v8  ;;  %v171_v11 = vmul.f32 0.03125, %v169_v9 }
 0x2f5   :  { %v173_v12 = vsub.f32 %v171_v11, %v172_v10 }
 0x2f7   :  { %v174_v13 = vadd.f32 1e-05, %v173_v12 }
 0x2f9   :  { %305 = vrsqrt.f32 %v174_v13  ;;  %vm181_vm1 = vweird.f32 %v174_v13 }
 0x2ff   :  { %v306_v14 = vpop.eup %305 }
 0x300   :  { %v176_v15 = vmul.f32 %v306_v14, %v174_v13  ;;  %vm182_vm0 = vweird.f32 %v306_v14 }
 0x301   :  { %vm183_vm3 = vmor %vm181_vm1, %vm182_vm0 }
 0x302   :  { %v177_v16 = vmul.f32 %v306_v14, %v176_v15 }
 0x304   :  { %v178_v17 = vmul.f32 0.5, %v177_v16 }
 0x306   :  { %v179_v18 = vsub.f32 1.5, %v178_v17 }
 0x308   :  { %v180_v20 = vmul.f32 %v306_v14, %v179_v18  ;;  %v264_v28 = vpop.permute.xlu1 %263 }
 0x309   :  { %v266_v31 = vadd.f32 %v264_v28, %v260_v30 }
 0x30a   :  { %v184_v21 = vsel %vm183_vm3, %v306_v14, %v180_v20 }
 0x30b   :  { %v185_v22 = vmul.f32 %v184_v21, %v161_v19  ;;  %v267_v34 = vmax.f32 %v266_v31, 0.0 }
 0x30d   :  { %190 = vperm.xlu0 %299, %v185_v22   ;;  %v186_v23 = vmul.f32 %v185_v22, %v170_v8 }
 0x30f   :  { %v187_v25 = vsub.f32 %v162_v24, %v186_v23 }
 0x315   :  { %196 = vperm.xlu0 %299, %v187_v25  }
 0x37f   :  { %v191_v27 = vpop.permute.xlu0 %190 }
 0x380   :  { %v193_v32 = vmul.f32 %v191_v27, %v158_v0 }
 0x387   :  { %v197_v33 = vpop.permute.xlu0 %196 }
 0x388   :  { %v199_v35 = vadd.f32 %v197_v33, %v193_v32 }
 0x38a   :  { %v268_v36 = vadd.f32 %v267_v34, %v199_v35 }
 0x38c   :  { %v269_v37 = vmax.f32 %v268_v36, 0.0 }
 0x38e   :  { %270 = vst.msk [vmem:[#allocation2] sm:$0xff] %vm76_vm2, %v269_v37 }
 0x38f   :  { %281 = dma.vmem_to_hbm [thread:$0]  %s277_s21, 128, %s279_s24, [#allocation3]  }
 0x390   :  { %331 = dma.done.wait [#allocation3], 128  }
 0x391   :  { %332 = vsyncadd [#allocation3], 4294967168 }
 0x392   :  { %286 = vsyncpa [#allocation3], 1 }

</bundles_post_ra>
